<compile_context>
chip_gen: v7x
topology: tpu7x:2x2x1
jax: 0.10.0
libtpu: 0.0.40
codegen_flags: <defaults>
</compile_context>

<pallas_src>
import jax
import jax.numpy as jnp
from jax.experimental import pallas as pl
from jax.experimental.pallas import tpu as pltpu

N_FEATURES = 20
LANES = 128              # vreg lane width; batch tiles are multiples of this
SMALL_BATCH_CUTOFF = 128 # below this, a fused XLA path beats kernel-launch overhead


def _round_up(n, m):
    return ((n + m - 1) // m) * m


def _ffn_kernel(xT_ref, w1_ref, b1_ref, w2_ref, b2_ref, w3_ref, b3_ref, o_ref):
    # Batch on lanes: xT is (20, TB); weights are PyTorch-native (out, in).
    xT = xT_ref[...]                                                        # (20, TB) f32

    h1 = jnp.dot(w1_ref[...], xT, preferred_element_type=jnp.float32) + b1_ref[...]
    h1 = jnp.maximum(h1, 0.0)                                               # (10, TB)

    h2 = jnp.dot(w2_ref[...], h1, preferred_element_type=jnp.float32) + b2_ref[...]
    h2 = jnp.maximum(h2, 0.0)                                               # (5, TB)

    h3 = jnp.dot(w3_ref[...], h2, preferred_element_type=jnp.float32) + b3_ref[...]
    o_ref[...] = jax.nn.sigmoid(h3)                                         # (1, TB) lane-dense


def feedforward_pallas(x, params, block_batch=2048):
    """x: (B, n_features) f32. params: PyTorch-layout w{i}:(out,in), b{i}:(out,)."""
    assert block_batch % LANES == 0, "batch tile must be a multiple of 128 lanes"
    B, F = x.shape

    # Batch tile: multiple of 128 lanes, capped at block_batch.
    TB = min(block_batch, _round_up(B, LANES))
    padded_B = _round_up(B, TB)
    n_tiles = padded_B // TB

    # Lane-major layout: put batch on the last (lane) axis, pad the tail tile.
    xT = jnp.transpose(x)                                    # (F, B)
    if padded_B != B:
        xT = jnp.pad(xT, ((0, 0), (0, padded_B - B)))        # (F, padded_B)

    w1, w2, w3 = params["w1"], params["w2"], params["w3"]     # (out, in)
    b1 = params["b1"].reshape(-1, 1)                          # (out, 1) -> broadcasts on lanes
    b2 = params["b2"].reshape(-1, 1)
    b3 = params["b3"].reshape(-1, 1)

    # Constant index_map -> parameter blocks are fetched once and stay resident in VMEM.
    resident = lambda a: pl.BlockSpec(a.shape, lambda i: (0, 0))

    out = pl.pallas_call(
        _ffn_kernel,
        out_shape=jax.ShapeDtypeStruct((1, padded_B), jnp.float32),
        grid=(n_tiles,),
        in_specs=[
            pl.BlockSpec((F, TB), lambda i: (0, i)),          # x^T tile, pipelined over batch
            resident(w1), resident(b1),
            resident(w2), resident(b2),
            resident(w3), resident(b3),
        ],
        out_specs=pl.BlockSpec((1, TB), lambda i: (0, i)),    # lane-dense output slab
        compiler_params=pltpu.CompilerParams(
            dimension_semantics=("parallel",),                # v7x: shard batch across 2 TCs
        ),
    )(xT, w1, b1, w2, b2, w3, b3)

    return out[0, :B].reshape(B, 1)


def feedforward_ref(x, p):
    """Pure-JAX reference (mirrors torch: y = x @ W^T + b)."""
    h = jnp.maximum(x @ p["w1"].T + p["b1"], 0.0)
    h = jnp.maximum(h @ p["w2"].T + p["b2"], 0.0)
    return jax.nn.sigmoid(h @ p["w3"].T + p["b3"])


def feedforward(x, params, block_batch=2048):
    """Dispatch: tiny batches go to the fused XLA path (kernel launch overhead dominates),
    larger batches use the Pallas kernel."""
    if x.shape[0] < SMALL_BATCH_CUTOFF:
        return feedforward_ref(x, params)
    return feedforward_pallas(x, params, block_batch=block_batch)


def init_params(key, n_features=N_FEATURES):
    """Deterministic init mimicking nn.Linear's uniform(-1/sqrt(fan_in), 1/sqrt(fan_in)).
    Stored in PyTorch-native layout: w (out, in), b (out,)."""
    dims = [n_features, n_features // 2, n_features // 4, 1]
    params = {}
    for i, (fan_in, fan_out) in enumerate(zip(dims[:-1], dims[1:]), start=1):
        key, kw, kb = jax.random.split(key, 3)
        bound = 1.0 / (fan_in ** 0.5)
        params[f"w{i}"] = jax.random.uniform(
            kw, (fan_out, fan_in), jnp.float32, minval=-bound, maxval=bound)
        params[f"b{i}"] = jax.random.uniform(
            kb, (fan_out,), jnp.float32, minval=-bound, maxval=bound)
    return params


if __name__ == "__main__":
    key = jax.random.PRNGKey(0)
    key, kx_small, kx_big = jax.random.split(key, 3)
    params = init_params(key)

    # Small demo batch (B=8): force the Pallas path (pads to a single 128-lane tile).
    x_small = jax.random.normal(kx_small, (8, N_FEATURES), jnp.float32)
    out_small = feedforward_pallas(x_small, params)
    jax.block_until_ready(out_small)
    ref_small = feedforward_ref(x_small, params)
    assert out_small.shape == (8, 1)
    assert jnp.allclose(out_small, ref_small, atol=1e-5, rtol=1e-5), "small-batch mismatch"

    # Larger batch not divisible by the tile: exercises the pipelined multi-step grid
    # (grid=(4,) with 256-row tiles) plus tail padding.
    x_big = jax.random.normal(kx_big, (1000, N_FEATURES), jnp.float32)
    out_big = feedforward(x_big, params, block_batch=256)
    jax.block_until_ready(out_big)
    ref_big = feedforward_ref(x_big, params)
    assert out_big.shape == (1000, 1)
    assert jnp.allclose(out_big, ref_big, atol=1e-5, rtol=1e-5), "large-batch mismatch"

    print("KERNEL_OK")
</pallas_src>

<mosaic_0001>
module attributes {stable_mosaic.version = 11 : i64} {
  func.func @_ffn_kernel(%arg0: i32, %arg1: memref<20x128xf32, #tpu.memory_space<vmem>>, %arg2: memref<10x20xf32, #tpu.memory_space<vmem>>, %arg3: memref<10x1xf32, #tpu.memory_space<vmem>>, %arg4: memref<5x10xf32, #tpu.memory_space<vmem>>, %arg5: memref<5x1xf32, #tpu.memory_space<vmem>>, %arg6: memref<1x5xf32, #tpu.memory_space<vmem>>, %arg7: memref<1x1xf32, #tpu.memory_space<vmem>>, %arg8: memref<1x128xf32, #tpu.memory_space<vmem>>) attributes {dimension_semantics = [#tpu.dimension_semantics<parallel>], iteration_bounds = array<i64: 1>, scalar_prefetch = 0 : i64, scratch_operands = 0 : i64, tpu.core_type = #tpu.core_type<tc>, window_params = [{transform_indices = @transform_0, window_bounds = array<i64: 20, 128>}, {pipeline_mode = #tpu.pipeline_mode<synchronous>, transform_indices = @transform_1, window_bounds = array<i64: 10, 20>}, {pipeline_mode = #tpu.pipeline_mode<synchronous>, transform_indices = @transform_2, window_bounds = array<i64: 10, 1>}, {pipeline_mode = #tpu.pipeline_mode<synchronous>, transform_indices = @transform_3, window_bounds = array<i64: 5, 10>}, {pipeline_mode = #tpu.pipeline_mode<synchronous>, transform_indices = @transform_4, window_bounds = array<i64: 5, 1>}, {pipeline_mode = #tpu.pipeline_mode<synchronous>, transform_indices = @transform_5, window_bounds = array<i64: 1, 5>}, {pipeline_mode = #tpu.pipeline_mode<synchronous>, transform_indices = @transform_6, window_bounds = array<i64: 1, 1>}, {transform_indices = @transform_7, window_bounds = array<i64: 1, 128>}]} {
    %c0 = arith.constant 0 : index
    %c0_0 = arith.constant 0 : index
    %0 = vector.load %arg1[%c0, %c0_0] : memref<20x128xf32, #tpu.memory_space<vmem>>, vector<20x128xf32>
    %c0_1 = arith.constant 0 : index
    %c0_2 = arith.constant 0 : index
    %1 = vector.load %arg2[%c0_1, %c0_2] : memref<10x20xf32, #tpu.memory_space<vmem>>, vector<10x20xf32>
    %cst = arith.constant dense<0.000000e+00> : vector<10x128xf32>
    %2 = tpu.matmul %1, %0, %cst {dimension_numbers = #tpu.dot_dimension_numbers<[1], [0], [0], [1], [0, 0, 1, 1], [], []>} : vector<10x20xf32>, vector<20x128xf32>, vector<10x128xf32> -> vector<10x128xf32>
    %c0_3 = arith.constant 0 : index
    %c0_4 = arith.constant 0 : index
    %3 = vector.load %arg3[%c0_3, %c0_4] : memref<10x1xf32, #tpu.memory_space<vmem>>, vector<10x1xf32>
    %4 = vector.broadcast %3 : vector<10x1xf32> to vector<10x128xf32>
    %5 = arith.addf %2, %4 : vector<10x128xf32>
    %cst_5 = arith.constant 0.000000e+00 : f32
    %6 = vector.broadcast %cst_5 : f32 to vector<10x128xf32>
    %7 = arith.maximumf %5, %6 : vector<10x128xf32>
    %c0_6 = arith.constant 0 : index
    %c0_7 = arith.constant 0 : index
    %8 = vector.load %arg4[%c0_6, %c0_7] : memref<5x10xf32, #tpu.memory_space<vmem>>, vector<5x10xf32>
    %cst_8 = arith.constant dense<0.000000e+00> : vector<5x128xf32>
    %9 = tpu.matmul %8, %7, %cst_8 {dimension_numbers = #tpu.dot_dimension_numbers<[1], [0], [0], [1], [0, 0, 1, 1], [], []>} : vector<5x10xf32>, vector<10x128xf32>, vector<5x128xf32> -> vector<5x128xf32>
    %c0_9 = arith.constant 0 : index
    %c0_10 = arith.constant 0 : index
    %10 = vector.load %arg5[%c0_9, %c0_10] : memref<5x1xf32, #tpu.memory_space<vmem>>, vector<5x1xf32>
    %11 = vector.broadcast %10 : vector<5x1xf32> to vector<5x128xf32>
    %12 = arith.addf %9, %11 : vector<5x128xf32>
    %cst_11 = arith.constant 0.000000e+00 : f32
    %13 = vector.broadcast %cst_11 : f32 to vector<5x128xf32>
    %14 = arith.maximumf %12, %13 : vector<5x128xf32>
    %c0_12 = arith.constant 0 : index
    %c0_13 = arith.constant 0 : index
    %15 = vector.load %arg6[%c0_12, %c0_13] : memref<1x5xf32, #tpu.memory_space<vmem>>, vector<1x5xf32>
    %cst_14 = arith.constant dense<0.000000e+00> : vector<1x128xf32>
    %16 = tpu.matmul %15, %14, %cst_14 {dimension_numbers = #tpu.dot_dimension_numbers<[1], [0], [0], [1], [0, 0, 1, 1], [], []>} : vector<1x5xf32>, vector<5x128xf32>, vector<1x128xf32> -> vector<1x128xf32>
    %c0_15 = arith.constant 0 : index
    %c0_16 = arith.constant 0 : index
    %17 = vector.load %arg7[%c0_15, %c0_16] : memref<1x1xf32, #tpu.memory_space<vmem>>, vector<1x1xf32>
    %18 = vector.broadcast %17 : vector<1x1xf32> to vector<1x128xf32>
    %19 = arith.addf %16, %18 : vector<1x128xf32>
    %20 = arith.negf %19 : vector<1x128xf32>
    %21 = math.exp %20 : vector<1x128xf32>
    %cst_17 = arith.constant 1.000000e+00 : f32
    %22 = vector.broadcast %cst_17 : f32 to vector<1x128xf32>
    %23 = arith.addf %22, %21 : vector<1x128xf32>
    %24 = arith.divf %22, %23 : vector<1x128xf32>
    %c0_18 = arith.constant 0 : index
    %c0_19 = arith.constant 0 : index
    %25 = vector.load %arg8[%c0_18, %c0_19] : memref<1x128xf32, #tpu.memory_space<vmem>>, vector<1x128xf32>
    tpu.vector_store %arg8[%c0_18, %c0_19], %24 {strides = array<i32>} : memref<1x128xf32, #tpu.memory_space<vmem>>, vector<1x128xf32>,
    return
  }
  func.func @transform_0(%arg0: i32) -> (i32, i32) {
    %c0_i32 = arith.constant 0 : i32
    %c0_i32_0 = arith.constant 0 : i32
    return %c0_i32, %arg0 : i32, i32
  }
  func.func @transform_1(%arg0: i32) -> (i32, i32) {
    %c0_i32 = arith.constant 0 : i32
    %c0_i32_0 = arith.constant 0 : i32
    %c0_i32_1 = arith.constant 0 : i32
    return %c0_i32, %c0_i32_0 : i32, i32
  }
  func.func @transform_2(%arg0: i32) -> (i32, i32) {
    %c0_i32 = arith.constant 0 : i32
    %c0_i32_0 = arith.constant 0 : i32
    %c0_i32_1 = arith.constant 0 : i32
    return %c0_i32, %c0_i32_0 : i32, i32
  }
  func.func @transform_3(%arg0: i32) -> (i32, i32) {
    %c0_i32 = arith.constant 0 : i32
    %c0_i32_0 = arith.constant 0 : i32
    %c0_i32_1 = arith.constant 0 : i32
    return %c0_i32, %c0_i32_0 : i32, i32
  }
  func.func @transform_4(%arg0: i32) -> (i32, i32) {
    %c0_i32 = arith.constant 0 : i32
    %c0_i32_0 = arith.constant 0 : i32
    %c0_i32_1 = arith.constant 0 : i32
    return %c0_i32, %c0_i32_0 : i32, i32
  }
  func.func @transform_5(%arg0: i32) -> (i32, i32) {
    %c0_i32 = arith.constant 0 : i32
    %c0_i32_0 = arith.constant 0 : i32
    %c0_i32_1 = arith.constant 0 : i32
    return %c0_i32, %c0_i32_0 : i32, i32
  }
  func.func @transform_6(%arg0: i32) -> (i32, i32) {
    %c0_i32 = arith.constant 0 : i32
    %c0_i32_0 = arith.constant 0 : i32
    %c0_i32_1 = arith.constant 0 : i32
    return %c0_i32, %c0_i32_0 : i32, i32
  }
  func.func @transform_7(%arg0: i32) -> (i32, i32) {
    %c0_i32 = arith.constant 0 : i32
    %c0_i32_0 = arith.constant 0 : i32
    return %c0_i32, %arg0 : i32, i32
  }
}

</mosaic_0001>

<bundles_post_ra>
// kernel: tpu_custom_call.1
= control target key start
LH: loop header
LB: loop body
LE: loop exit
PB: predicated region body
PF: predicated region fallthrough
CT: control target
= control target key end

     0   :  { %s559_s0 = inlined_call_operand.vmem [shape: f32[20,128], index: 0, kind: input, shape index: {}]   ;;  %s560_s1 = inlined_call_operand.hbm [shape: f32[10,20], index: 1, kind: input, shape index: {}]   ;;  %s561_s2 = inlined_call_operand.vmem [shape: f32[10,1], index: 2, kind: input, shape index: {}]   ;;  %s562_s3 = inlined_call_operand.vmem [shape: f32[5,10], index: 3, kind: input, shape index: {}]   ;;  %s563_s4 = inlined_call_operand.vmem [shape: f32[5,1], index: 4, kind: input, shape index: {}]   ;;  %s564_s5 = inlined_call_operand.vmem [shape: f32[1,5], index: 5, kind: input, shape index: {}]   ;;  %s565_s6 = inlined_call_operand.<no memory space> [shape: f32[1,1], index: 6, kind: input, shape index: {}]   ;;  %s566_s7 = inlined_call_operand.hbm [shape: f32[1,128], index: 7, kind: output, shape index: {}]  }
   0x1   :  { %v12_v0 = vstv %s565_s6 }
   0x2   :  { %13 = vst [vmem:[#allocation2] sm:$0x1] %v12_v0 }
   0x3   :  { %14 = vsyncpa [#allocation4], 0 }
   0x4   :  { %15 = vsyncpa [#allocation5], 0  ;;  %s455_s26 = smov [#allocation3]   ;;  %s407_s30 = scalar_lea.hbm %s560_s1, 256 }
   0x5   :  { %s23_s27 = sshll.u32 %s455_s26, 4  ;;  %p408_p0 = scmp.ne.s32.totalorder %s560_s1, %s407_s30  ;;  %s24_s27 = int_to_ptr.vmem [resolvable:$true] %s23_s27 }
   0x6   :  { %p411_p1 = scmp.lt.u32.totalorder %s407_s30, %s560_s1 }
   0x8   :  { %p413_p2 = pnand %p411_p1, %p408_p0 }
   0xa   :  { %416 = shalt.err (!%p413_p2)
}
   0xb   :  { %s417_s6 = scalar_lea.vmem %s24_s27, 256  ;;  %p422_p4 = scmp.lt.s32.totalorder %s24_s27, %s24_s27 }
   0xc   :  { %p418_p3 = scmp.ne.s32.totalorder %s24_s27, %s417_s6  ;;  %p423_p5 = scmp.lt.s32.totalorder %s417_s6, %s417_s6 }
   0xe   :  { %p424_p6 = por %p423_p5, %p422_p4 }
  0x10   :  { %p425_p7 = pnand %p424_p6, %p418_p3 }
  0x12   :  { %428 = shalt.err (!%p425_p7)
}
  0x13   :  { %s456_s12 = smov 128   ;;  %s457_s13 = smov 8  }
  0x14   :  { %29 = dma.hbm_to_vmem [thread:$0]  %s560_s1, 256, %s24_s27, [#allocation4], %s456_s12, %s456_s12, %s457_s13  }
  0x15   :  { %451 = dma.done.wait [#allocation4], 256  }
  0x16   :  { %452 = vsyncadd [#allocation4], 4294967040  ;;  %v458_v1 = vmov 0   ;;  %vm60_vm0 = vcmask 162816   ;;  %v43_v2 = vld [vmem:[%s559_s0] sm:$0xff]  ;;  %v44_v3 = vld [vmem:[%s559_s0 + $0x8] sm:$0xff]  ;;  %v241_v30 = vlaneseq }
  0x17   :  { %401 = vset.pattern.permute.xlu0 %v458_v1  ;;  %402 = vset.pattern.permute.xlu1 %v458_v1  ;;  %v384_v4 = vpack.c.bf16 %v44_v3, %v43_v2  ;;  %v46_v5 = vld [vmem:[#allocation3] sm:$0xff]  ;;  %v45_v7 = vld [vmem:[%s559_s0 + $0x10] sm:$0xf]  ;;  %vm67_vm1 = vcmask 1043456   ;;  %v47_v9 = vld [vmem:[#allocation3 + $0x8] sm:$0x3] }
  0x18   :  { %v48_v6 = vld [vmem:[%s561_s2] sm:$0xff]  ;;  %369 = vmatprep.mubr.msk.f32.mxu0 %vm60_vm0, %v46_v5  ;;  %v49_v8 = vld [vmem:[%s561_s2 + $0x8] sm:$0x3]  ;;  %v459_v10 = vmov 0.0|0.0   ;;  %vm460_vm2 = vmmov 0   ;;  %v461_v11 = vmov 0.0  }
  0x19   :  { %52 = vperm.xlu0 %401, %v48_v6   ;;  %385 = vmatprep.subr.bf16.mxu0 %v384_v4  ;;  %v149_v12 = vld [vmem:[%s563_s4] sm:$0x1f]  ;;  %vm159_vm3 = vcmask 1041408   ;;  %vm462_vm4 = vmmov 1   ;;  %vm155_vm6 = vcmask 80896   ;;  %vm249_vm7 = vcmask 1044480  }
  0x1a   :  { %387 = vmatpush3.bf16.msra.mxu0 %v384_v4  ;;  %388 = vmatprep.subr.bf16.mxu1 %v459_v10  ;;  %v235_v13 = vld [vmem:[#allocation2] sm:$0x1]  ;;  %vm390_vm5 = vmpackc.low %vm159_vm3, %vm462_vm4  ;;  %vm245_vm8 = vcmask 39936   ;;  %v242_v31 = vshrl.u32 %v241_v30, 7 }
  0x1b   :  { %367 = vmatprep.subr.msk.mxu0 %vm67_vm1, %v45_v7  ;;  %376 = vmatprep.mubr.msk.f32.mxu1 %vm460_vm2, %v461_v11  ;;  %v148_v23 = vld [vmem:[%s562_s3] sm:$0x1f]  ;;  %s463_s3 = smov [#allocation6]  }
  0x1c   :  { %152 = vperm.xlu1 %402, %v149_v12   ;;  %v234_v29 = vld [vmem:[%s564_s5] sm:$0x1]  ;;  %v243_v32 = vsub.s32 0, %v242_v31  ;;  %s336_s28 = sshll.u32 %s463_s3, 4  ;;  %s337_s28 = int_to_ptr.vmem [resolvable:$true] %s336_s28 }
  0x1d   :  { %57 = vperm.xlu0 %401, %v49_v8   ;;  %s429_s5 = scalar_lea.vmem %s337_s28, 16  ;;  %s433_s29 = scalar_lea.vmem %s337_s28, 32 }
  0x1e   :  { %368 = vmatpush3.msk.msra.mxu0 %vm67_vm1, %v45_v7  ;;  %p430_p8 = scmp.ne.s32.totalorder %s337_s28, %s429_s5  ;;  %p434_p9 = scmp.lt.s32.totalorder %s337_s28, %s337_s28 }
  0x1f   :  { %370 = vmatmul.mubr.msk.f32.vlgmr.msra.gmra.mrb[0].mxu0 %vm60_vm0, %v47_v9  ;;  %p435_p10 = scmp.lt.s32.totalorder %s433_s29, %s429_s5 }
  0x20   :  { %238 = vperm.xlu1 %402, %v235_v13  }
  0x21   :  { %p436_p11 = por %p435_p10, %p434_p9 }
  0x23   :  { %p437_p12 = pnand %p436_p11, %p430_p8 }
  0x98   :  { %v53_v14 = vpop.permute.xlu0 %52 }
  0x9b   :  { %v153_v24 = vpop.permute.xlu1 %152 }
  0x9c   :  { %v58_v15 = vpop.permute.xlu0 %57 }
  0x9f   :  { %v239_v33 = vpop.permute.xlu1 %238 }
  0xa0   :  { %v244_v34 = vrot.slane %v239_v33, %v243_v32 }
  0xf2   :  { %v371_v16 = vpop.f32.mrb[0].mxu0 }
  0xf3   :  { %v143_v17 = vadd.f32 %v371_v16, %v58_v15  ;;  %v137_v18 = vpop.f32.mrb[1].mxu0 }
  0xf4   :  { %v138_v19 = vadd.f32 %v137_v18, %v53_v14 }
  0xf5   :  { %v147_v20 = vmax.f32 %v143_v17, 0.0 }
  0xf6   :  { %v146_v21 = vmax.f32 %v138_v19, 0.0 }
  0xf8   :  { %v389_v22 = vpack.c.bf16 %v147_v20, %v146_v21 }
  0xfa   :  { %391 = vmatpush3.bf16.msk.msra.mxu1 %vm390_vm5, %v389_v22 }
  0xfb   :  { %379 = vmatprep.subr.mxu1 %v461_v11 }
  0xfd   :  { %377 = vmatmul.mubr.msk.f32.vlgmr.msra.gmra.mrb[0].mxu1 %vm155_vm6, %v148_v23 }
  0xfe   :  { %381 = vmatprep.mubr.msk.f32.mxu1 %vm460_vm2, %v461_v11 }
 0x1d0   :  { %v229_v25 = vpop.f32.mrb[0].mxu1 }
 0x1d1   :  { %v230_v26 = vadd.f32 %v229_v25, %v153_v24  ;;  %v378_v27 = vpop.f32.mrb[1].mxu1 }
 0x1d3   :  { %v233_v28 = vmax.f32 %v230_v26, 0.0 }
 0x1d5   :  { %380 = vmatpush3.msk.msra.mxu1 %vm249_vm7, %v233_v28 }
 0x1d6   :  { %382 = vmatmul.mubr.msk.f32.vlgmr.msra.gmra.mrb[2].mxu1 %vm245_vm8, %v234_v29 }
 0x2a9   :  { %v319_v35 = vpop.f32.mrb[2].mxu1 }
 0x2aa   :  { %v320_v36 = vadd.f32 %v319_v35, %v244_v34  ;;  %v383_v37 = vpop.f32.mrb[3].mxu1 }
 0x2ac   :  { %v352_v38 = vmul.f32 -1.442695, %v320_v36 }
 0x2ae   :  { %403 = vpow2.f32 %v352_v38 }
 0x2b8   :  { %v404_v39 = vpop.eup %403 }
 0x2b9   :  { %v326_v40 = vadd.f32 1.0, %v404_v39 }
 0x2bb   :  { %405 = vrcp.f32 %v326_v40 }
 0x2c5   :  { %v406_v41 = vpop.eup %405 }
 0x2c6   :  { %329 = vst [vmem:[#allocation6] sm:$0x1] %v406_v41 }
 0x2c7   :  { %440 = shalt.err (!%p437_p12)
}
 0x2c8   :  { %s441_s9 = scalar_lea.hbm %s566_s7, 16 }
 0x2c9   :  { %p442_p13 = scmp.ne.s32.totalorder %s566_s7, %s441_s9  ;;  %p445_p0 = scmp.lt.u32.totalorder %s441_s9, %s566_s7 }
 0x2cb   :  { %p447_p1 = pnand %p445_p0, %p442_p13 }
 0x2cd   :  { %450 = shalt.err (!%p447_p1)
}
 0x2ce   :  { %339 = dma.vmem_to_hbm [thread:$0]  %s337_s28, 16, %s566_s7, [#allocation5]  }
 0x2cf   :  { %453 = dma.done.wait [#allocation5], 16  }
 0x2d0   :  { %454 = vsyncadd [#allocation5], 4294967280 }
 0x2d1   :  { %343 = vsyncpa [#allocation4], 1 }
 0x2d2   :  { %344 = vsyncpa [#allocation5], 1 }

</bundles_post_ra>
